<compile_context>
chip_gen: v6e
topology: v6e:2x2x1
jax: 0.10.0
libtpu: 0.0.40
codegen_flags: <defaults>
</compile_context>

<pallas_src>
import jax
import jax.numpy as jnp
from jax.experimental import pallas as pl
from jax.experimental.pallas import tpu as pltpu


def _round_up(x, m):
    return (x + m - 1) // m * m


def _padded_tile_bytes(rows, cols, itemsize):
    # Mosaic VMEM layout pads the last two dims to (8, 128) tiles.
    return _round_up(rows, 8) * _round_up(cols, 128) * itemsize


def lyric_embedding_kernel(word_ids_ref, rem_ids_ref, word_tab_ref, rem_tab_ref,
                           b_ref, out_ref):
    word_ids = word_ids_ref[...]             # (T, 1) int32
    rem_ids = rem_ids_ref[...]               # (T, 1) int32
    word_tab = word_tab_ref[...]             # (Vw, D), projection-fused table
    rem_tab = rem_tab_ref[...]               # (Vr, D), projection-fused table

    t = word_ids.shape[0]
    vw = word_tab.shape[0]
    vr = rem_tab.shape[0]
    tab_dt = word_tab.dtype                  # f32 (exact) or bf16 (fast MXU path)

    # Embedding gather expressed as one-hot matmuls (exact: one-hot is exactly 0/1
    # in any float dtype; MXU-friendly). No concat: the projection is pre-fused into
    # the tables, so the two gathers sum directly into one f32 accumulator.
    word_oh = (word_ids == jax.lax.broadcasted_iota(jnp.int32, (t, vw), 1)).astype(tab_dt)
    rem_oh = (rem_ids == jax.lax.broadcasted_iota(jnp.int32, (t, vr), 1)).astype(tab_dt)

    acc = jnp.dot(word_oh, word_tab, preferred_element_type=jnp.float32)        # (T, D)
    acc = acc + jnp.dot(rem_oh, rem_tab, preferred_element_type=jnp.float32)    # (T, D)
    out_ref[...] = (acc + b_ref[...]).astype(out_ref.dtype)


def lyric_embedding(word, remainder, word_tab, rem_tab, proj_w_t, proj_b,
                    *, tile_n=512, table_dtype=None):
    """word, remainder: (B, S) integer ids. Returns (B, S, D) float32.

    word_tab:  (Vw, D) tgt_word_emb weight.
    rem_tab:   (Vr, D) rem_emb weight (row 0 zeroed, padding_idx=0).
    proj_w_t:  (2D, D) token_emb_proj weight, pre-transposed from torch's (D, 2D).
    proj_b:    (D,)    token_emb_proj bias.
    table_dtype: optional dtype for the fused tables (e.g. jnp.bfloat16 for bf16 MXU on v5e).
    """
    B, S = word.shape
    D = word_tab.shape[1]
    Vw = word_tab.shape[0]
    Vr = rem_tab.shape[0]
    N = B * S

    # Fuse the Linear(2D -> D) into the tables (one-time (Vw+Vr) x D x D cost outside
    # the kernel): cat([we, re], -1) @ W + b == we @ W[:D] + re @ W[D:] + b.
    tab_dt = table_dtype or word_tab.dtype
    fused_word = (word_tab @ proj_w_t[:D]).astype(tab_dt)          # (Vw, D)
    fused_rem = (rem_tab @ proj_w_t[D:]).astype(tab_dt)            # (Vr, D)
    bias = proj_b.reshape(1, D).astype(jnp.float32)

    # Token tiling: pad N up to a multiple of tile_n (itself a multiple of 8).
    tile_n = min(tile_n, _round_up(N, 8))
    n_pad = _round_up(N, tile_n)
    word_ids = jnp.zeros((n_pad, 1), jnp.int32).at[:N, 0].set(
        word.reshape(N).astype(jnp.int32))
    rem_ids = jnp.zeros((n_pad, 1), jnp.int32).at[:N, 0].set(
        remainder.reshape(N).astype(jnp.int32))
    grid = (n_pad // tile_n,)

    # Explicit VMEM budget: resident tables + bias + double-buffered id/out tiles +
    # one-hot intermediates, with 2x headroom (all figures (8,128)-tile padded).
    itm = jnp.dtype(tab_dt).itemsize
    footprint = (
        _padded_tile_bytes(Vw, D, itm) + _padded_tile_bytes(Vr, D, itm)      # tables
        + _padded_tile_bytes(1, D, 4)                                        # bias
        + 2 * 2 * _padded_tile_bytes(tile_n, 1, 4)                           # id tiles (x2 in, x2 buf)
        + 2 * _padded_tile_bytes(tile_n, D, 4)                               # out tile (x2 buf)
        + _padded_tile_bytes(tile_n, Vw, 4) + _padded_tile_bytes(tile_n, Vr, 4)  # one-hots
    )
    vmem_limit = int(min(max(2 * footprint, 8 << 20), 64 << 20))

    resident = lambda i: (0, 0)   # full table / bias block, re-used every grid step
    out = pl.pallas_call(
        lyric_embedding_kernel,
        out_shape=jax.ShapeDtypeStruct((n_pad, D), jnp.float32),
        grid=grid,
        in_specs=[
            pl.BlockSpec((tile_n, 1), lambda i: (i, 0)),   # word ids (streamed)
            pl.BlockSpec((tile_n, 1), lambda i: (i, 0)),   # remainder ids (streamed)
            pl.BlockSpec((Vw, D), resident),               # fused word table (resident)
            pl.BlockSpec((Vr, D), resident),               # fused remainder table (resident)
            pl.BlockSpec((1, D), resident),                # bias (resident)
        ],
        out_specs=pl.BlockSpec((tile_n, D), lambda i: (i, 0)),
        compiler_params=pltpu.CompilerParams(
            dimension_semantics=("parallel",),
            vmem_limit_bytes=vmem_limit,
        ),
    )(word_ids, rem_ids, fused_word, fused_rem, bias)
    return out[:N].reshape(B, S, D)


if __name__ == "__main__":
    # Small deterministic config (use_cond=True branch).
    B, S = 2, 8            # batch, sequence length
    D = 32                 # d_embed
    WORD_SIZE = 64         # len(tgt_tknzr)
    REM_SIZE = 16          # len(lyric2word_dict['Remainder'])

    key = jax.random.PRNGKey(0)
    k_wtab, k_rtab, k_w, k_b, k_word, k_rem = jax.random.split(key, 6)

    # tgt_word_emb weight: Embedding(word_size, D) with std = D**-0.5 (as in helper).
    word_tab = jax.random.normal(k_wtab, (WORD_SIZE, D), jnp.float32) * (D ** -0.5)
    # rem_emb: Embedding(rem_size, D, padding_idx=0) -> row 0 zeroed.
    rem_tab = jax.random.normal(k_rtab, (REM_SIZE, D), jnp.float32) * (D ** -0.5)
    rem_tab = rem_tab.at[0].set(0.0)
    # token_emb_proj: nn.Linear(2D, D). torch weight is (D, 2D); store transposed (2D, D).
    proj_w_t = jax.random.normal(k_w, (2 * D, D), jnp.float32) * (2 * D) ** -0.5
    proj_b = jax.random.normal(k_b, (D,), jnp.float32) * 0.01

    word = jax.random.randint(k_word, (B, S), 0, WORD_SIZE, jnp.int32)
    remainder = jax.random.randint(k_rem, (B, S), 0, REM_SIZE, jnp.int32)

    out = lyric_embedding(word, remainder, word_tab, rem_tab, proj_w_t, proj_b)
    out = jax.block_until_ready(out)

    # Pure-JAX reference check (unfused math; fusion only reorders FP accumulation).
    ref = jnp.concatenate([jnp.take(word_tab, word, axis=0),
                           jnp.take(rem_tab, remainder, axis=0)], axis=-1) @ proj_w_t + proj_b
    assert out.shape == (B, S, D)
    assert jnp.allclose(out, ref, atol=1e-4, rtol=1e-4), float(jnp.max(jnp.abs(out - ref)))
    print("KERNEL_OK")
</pallas_src>

<mosaic_0001>
module attributes {stable_mosaic.version = 11 : i64} {
  func.func @lyric_embedding_kernel(%arg0: i32, %arg1: memref<16x1xi32, #tpu.memory_space<vmem>>, %arg2: memref<16x1xi32, #tpu.memory_space<vmem>>, %arg3: memref<64x32xf32, #tpu.memory_space<vmem>>, %arg4: memref<16x32xf32, #tpu.memory_space<vmem>>, %arg5: memref<1x32xf32, #tpu.memory_space<vmem>>, %arg6: memref<16x32xf32, #tpu.memory_space<vmem>>) attributes {dimension_semantics = [#tpu.dimension_semantics<parallel>], iteration_bounds = array<i64: 1>, scalar_prefetch = 0 : i64, scratch_operands = 0 : i64, tpu.core_type = #tpu.core_type<tc>, window_params = [{transform_indices = @transform_0, window_bounds = array<i64: 16, 1>}, {transform_indices = @transform_1, window_bounds = array<i64: 16, 1>}, {pipeline_mode = #tpu.pipeline_mode<synchronous>, transform_indices = @transform_2, window_bounds = array<i64: 64, 32>}, {pipeline_mode = #tpu.pipeline_mode<synchronous>, transform_indices = @transform_3, window_bounds = array<i64: 16, 32>}, {pipeline_mode = #tpu.pipeline_mode<synchronous>, transform_indices = @transform_4, window_bounds = array<i64: 1, 32>}, {transform_indices = @transform_5, window_bounds = array<i64: 16, 32>}]} {
    %c0 = arith.constant 0 : index
    %c0_0 = arith.constant 0 : index
    %0 = vector.load %arg1[%c0, %c0_0] : memref<16x1xi32, #tpu.memory_space<vmem>>, vector<16x1xi32>
    %c0_1 = arith.constant 0 : index
    %c0_2 = arith.constant 0 : index
    %1 = vector.load %arg2[%c0_1, %c0_2] : memref<16x1xi32, #tpu.memory_space<vmem>>, vector<16x1xi32>
    %c0_3 = arith.constant 0 : index
    %c0_4 = arith.constant 0 : index
    %2 = vector.load %arg3[%c0_3, %c0_4] : memref<64x32xf32, #tpu.memory_space<vmem>>, vector<64x32xf32>
    %c0_5 = arith.constant 0 : index
    %c0_6 = arith.constant 0 : index
    %3 = vector.load %arg4[%c0_5, %c0_6] : memref<16x32xf32, #tpu.memory_space<vmem>>, vector<16x32xf32>
    %4 = tpu.iota {dimensions = array<i32: 1>} : vector<16x64xi32>
    %5 = vector.broadcast %0 : vector<16x1xi32> to vector<16x64xi32>
    %6 = arith.cmpi eq, %5, %4 : vector<16x64xi32>
    %7 = arith.extui %6 : vector<16x64xi1> to vector<16x64xi32>
    %8 = arith.sitofp %7 : vector<16x64xi32> to vector<16x64xf32>
    %9 = tpu.iota {dimensions = array<i32: 1>} : vector<16x16xi32>
    %10 = vector.broadcast %1 : vector<16x1xi32> to vector<16x16xi32>
    %11 = arith.cmpi eq, %10, %9 : vector<16x16xi32>
    %12 = arith.extui %11 : vector<16x16xi1> to vector<16x16xi32>
    %13 = arith.sitofp %12 : vector<16x16xi32> to vector<16x16xf32>
    %cst = arith.constant dense<0.000000e+00> : vector<16x32xf32>
    %14 = tpu.matmul %8, %2, %cst {dimension_numbers = #tpu.dot_dimension_numbers<[1], [0], [0], [1], [0, 0, 1, 1], [], []>} : vector<16x64xf32>, vector<64x32xf32>, vector<16x32xf32> -> vector<16x32xf32>
    %cst_7 = arith.constant dense<0.000000e+00> : vector<16x32xf32>
    %15 = tpu.matmul %13, %3, %cst_7 {dimension_numbers = #tpu.dot_dimension_numbers<[1], [0], [0], [1], [0, 0, 1, 1], [], []>} : vector<16x16xf32>, vector<16x32xf32>, vector<16x32xf32> -> vector<16x32xf32>
    %16 = arith.addf %14, %15 : vector<16x32xf32>
    %c0_8 = arith.constant 0 : index
    %c0_9 = arith.constant 0 : index
    %17 = vector.load %arg5[%c0_8, %c0_9] : memref<1x32xf32, #tpu.memory_space<vmem>>, vector<1x32xf32>
    %18 = vector.broadcast %17 : vector<1x32xf32> to vector<16x32xf32>
    %19 = arith.addf %16, %18 : vector<16x32xf32>
    %c0_10 = arith.constant 0 : index
    %c0_11 = arith.constant 0 : index
    %20 = vector.load %arg6[%c0_10, %c0_11] : memref<16x32xf32, #tpu.memory_space<vmem>>, vector<16x32xf32>
    tpu.vector_store %arg6[%c0_10, %c0_11], %19 {strides = array<i32>} : memref<16x32xf32, #tpu.memory_space<vmem>>, vector<16x32xf32>,
    return
  }
  func.func @transform_0(%arg0: i32) -> (i32, i32) {
    %c0_i32 = arith.constant 0 : i32
    %c0_i32_0 = arith.constant 0 : i32
    return %arg0, %c0_i32 : i32, i32
  }
  func.func @transform_1(%arg0: i32) -> (i32, i32) {
    %c0_i32 = arith.constant 0 : i32
    %c0_i32_0 = arith.constant 0 : i32
    return %arg0, %c0_i32 : i32, i32
  }
  func.func @transform_2(%arg0: i32) -> (i32, i32) {
    %c0_i32 = arith.constant 0 : i32
    %c0_i32_0 = arith.constant 0 : i32
    %c0_i32_1 = arith.constant 0 : i32
    return %c0_i32, %c0_i32_0 : i32, i32
  }
  func.func @transform_3(%arg0: i32) -> (i32, i32) {
    %c0_i32 = arith.constant 0 : i32
    %c0_i32_0 = arith.constant 0 : i32
    %c0_i32_1 = arith.constant 0 : i32
    return %c0_i32, %c0_i32_0 : i32, i32
  }
  func.func @transform_4(%arg0: i32) -> (i32, i32) {
    %c0_i32 = arith.constant 0 : i32
    %c0_i32_0 = arith.constant 0 : i32
    %c0_i32_1 = arith.constant 0 : i32
    return %c0_i32, %c0_i32_0 : i32, i32
  }
  func.func @transform_5(%arg0: i32) -> (i32, i32) {
    %c0_i32 = arith.constant 0 : i32
    %c0_i32_0 = arith.constant 0 : i32
    return %arg0, %c0_i32 : i32, i32
  }
}

</mosaic_0001>

<bundles_post_ra>
// kernel: tpu_custom_call.1
= control target key start
LH: loop header
LB: loop body
LE: loop exit
PB: predicated region body
PF: predicated region fallthrough
CT: control target
= control target key end

     0   :  { %v331_v2 = vmov 0   ;;  %s414_s0 = inlined_call_operand.vmem [shape: s32[16,1], index: 0, kind: input, shape index: {}]   ;;  %s415_s1 = inlined_call_operand.vmem [shape: s32[16,1], index: 1, kind: input, shape index: {}]   ;;  %s416_s2 = inlined_call_operand.vmem [shape: f32[64,32], index: 2, kind: input, shape index: {}]   ;;  %s417_s3 = inlined_call_operand.vmem [shape: f32[16,32], index: 3, kind: input, shape index: {}]   ;;  %s418_s4 = inlined_call_operand.vmem [shape: f32[1,32], index: 4, kind: input, shape index: {}]   ;;  %s419_s5 = inlined_call_operand.hbm [shape: f32[16,32], index: 5, kind: output, shape index: {}]  }
   0x1   :  { %v22_v0 = vld [vmem:[%s414_s0 + $0x8] sm:$0xff]  ;;  %v21_v1 = vld [vmem:[%s414_s0] sm:$0xff]  ;;  %308 = vset.pattern.permute.xlu1 %v331_v2  ;;  %307 = vset.pattern.permute.xlu0 %v331_v2  ;;  %v32_v3 = vld [vmem:[%s416_s2 + $0x38] sm:$0xff] }
   0x2   :  { %41 = vperm.xlu1 %308, %v22_v0   ;;  %38 = vperm.xlu0 %307, %v21_v1   ;;  %v31_v4 = vld [vmem:[%s416_s2 + $0x30] sm:$0xff]  ;;  %v24_v5 = vld [vmem:[%s415_s1 + $0x8] sm:$0xff]  ;;  %v23_v6 = vld [vmem:[%s415_s1] sm:$0xff] }
   0x3   :  { %283 = vmatprep.subr.mxu1 %v32_v3  ;;  %v34_v7 = vld [vmem:[%s417_s3 + $0x8] sm:$0xff] }
   0x4   :  { %284 = vmatpush3.msra.mxu1 %v32_v3 }
   0x5   :  { %10 = vsyncpa [#allocation3], 0  ;;  %285 = vmatprep.subr.mxu1 %v31_v4  ;;  %v30_v8 = vld [vmem:[%s416_s2 + $0x28] sm:$0xff]  ;;  %276 = vmatprep.subr.mxu0 %v34_v7  ;;  %v33_v9 = vld [vmem:[%s417_s3] sm:$0xff]  ;;  %v35_v15 = vlaneseq  ;;  %vm143_vm0 = vcmask 523264   ;;  %v332_v19 = vmov 0.0  }
   0x6   :  { %53 = vperm.xlu1 %308, %v24_v5   ;;  %50 = vperm.xlu0 %307, %v23_v6   ;;  %v29_v10 = vld [vmem:[%s416_s2 + $0x20] sm:$0xff]  ;;  %v28_v11 = vld [vmem:[%s416_s2 + $0x18] sm:$0xff]  ;;  %v27_v12 = vld [vmem:[%s416_s2 + $0x10] sm:$0xff]  ;;  %vm61_vm3 = vcmask 130048   ;;  %s333_s19 = smov [#allocation2]   ;;  %vm234_vm6 = vcmask 261120  }
   0x7   :  { %286 = vmatpush3.msra.mxu1 %v31_v4  ;;  %277 = vmatpush3.msra.mxu0 %v34_v7  ;;  %v26_v13 = vld [vmem:[%s416_s2 + $0x8] sm:$0xff]  ;;  %v25_v14 = vld [vmem:[%s416_s2] sm:$0xff]  ;;  %v36_v16 = vand.u32 127, %v35_v15  ;;  %s242_s20 = sshll.u32 %s333_s19, 4  ;;  %s243_s20 = int_to_ptr.vmem [resolvable:$true] %s242_s20 }
   0x8   :  { %287 = vmatprep.subr.mxu1 %v30_v8  ;;  %278 = vmatprep.subr.mxu0 %v33_v9  ;;  %v261_v28 = vld [vmem:[%s418_s4] ss:$0 sm:$0xff]  ;;  %s309_s21 = scalar_lea.vmem %s243_s20, 256  ;;  %p314_p1 = scmp.lt.s32.totalorder %s243_s20, %s243_s20 }
   0x9   :  { %288 = vmatpush3.msra.mxu1 %v30_v8  ;;  %279 = vmatpush3.msra.mxu0 %v33_v9  ;;  %p310_p0 = scmp.ne.s32.totalorder %s243_s20, %s309_s21  ;;  %p315_p2 = scmp.lt.s32.totalorder %s309_s21, %s309_s21 }
   0xa   :  { %289 = vmatprep.subr.mxu1 %v29_v10 }
   0xb   :  { %290 = vmatpush3.msra.mxu1 %v29_v10  ;;  %p316_p3 = por %p315_p2, %p314_p1 }
   0xc   :  { %291 = vmatprep.subr.mxu1 %v28_v11 }
   0xd   :  { %292 = vmatpush3.msra.mxu1 %v28_v11  ;;  %p317_p4 = pnand %p316_p3, %p310_p0 }
   0xe   :  { %293 = vmatprep.subr.mxu1 %v27_v12 }
   0xf   :  { %294 = vmatpush3.msra.mxu1 %v27_v12 }
  0x10   :  { %295 = vmatprep.subr.mxu1 %v26_v13 }
  0x11   :  { %296 = vmatpush3.msra.mxu1 %v26_v13 }
  0x12   :  { %297 = vmatprep.subr.mxu1 %v25_v14 }
  0x13   :  { %298 = vmatpush3.msra.mxu1 %v25_v14 }
  0x7d   :  { %v42_v17 = vpop.permute.xlu1 %41  ;;  %v39_v18 = vpop.permute.xlu0 %38 }
  0x7e   :  { %vm44_vm1 = vcmp.eq.s32.totalorder %v42_v17, %v36_v16  ;;  %vm43_vm2 = vcmp.eq.s32.totalorder %v39_v18, %v36_v16 }
  0x7f   :  { %v254_v20 = vsel %vm44_vm1, 1.0, %v332_v19  ;;  %v253_v21 = vsel %vm43_vm2, 1.0, %v332_v19 }
  0x80   :  { %299 = vmatprep.mubr.msk.f32.mxu1 %vm143_vm0, %v253_v21 }
  0x81   :  { %v54_v22 = vpop.permute.xlu1 %53  ;;  %300 = vmatmul.mubr.msk.f32.vlgmr.msra.gmra.mxu1 %vm143_vm0, %v254_v20  ;;  %v51_v23 = vpop.permute.xlu0 %50 }
  0x82   :  { %vm56_vm4 = vcmp.eq.s32.totalorder %v54_v22, %v36_v16  ;;  %vm55_vm5 = vcmp.eq.s32.totalorder %v51_v23, %v36_v16 }
  0x83   :  { %v256_v24 = vsel %vm56_vm4, 1.0, %v332_v19  ;;  %v255_v25 = vsel %vm55_vm5, 1.0, %v332_v19 }
  0x84   :  { %280 = vmatprep.mubr.msk.f32.mxu0 %vm61_vm3, %v255_v25 }
  0x85   :  { %281 = vmatmul.mubr.msk.f32.vlgmr.msra.gmra.mxu0 %vm61_vm3, %v256_v24 }
 0x141   :  { %v301_v26 = vpop.f32.mrf.mxu1 }
 0x143   :  { %v216_v30 = vpop.f32.mrf.mxu1 }
 0x145   :  { %v282_v27 = vpop.f32.mrf.mxu0 }
 0x146   :  { %v222_v29 = vadd.f32 %v301_v26, %v282_v27 }
 0x147   :  { %v134_v31 = vpop.f32.mrf.mxu0 }
 0x148   :  { %v233_v32 = vadd.f32 %v261_v28, %v222_v29  ;;  %v217_v33 = vadd.f32 %v216_v30, %v134_v31 }
 0x14a   :  { %236 = vst.msk [vmem:[#allocation2 + $0x8] sm:$0xff] %vm234_vm6, %v233_v32  ;;  %v232_v34 = vadd.f32 %v261_v28, %v217_v33 }
 0x14c   :  { %235 = vst.msk [vmem:[#allocation2] sm:$0xff] %vm234_vm6, %v232_v34 }
 0x14d   :  { %320 = shalt.err (!%p317_p4)
}
 0x14e   :  { %s334_s4 = smov 128   ;;  %s335_s22 = smov 8  }
 0x14f   :  { %248 = dma.vmem_to_hbm [thread:$0]  %s243_s20, 256, %s419_s5, [#allocation3], %s334_s4, %s334_s4, %s335_s22  }
 0x150   :  { %329 = dma.done.wait [#allocation3], 256  }
 0x151   :  { %330 = vsyncadd [#allocation3], 4294967040 }
 0x152   :  { %252 = vsyncpa [#allocation3], 1 }

</bundles_post_ra>
